<compile_context>
chip_gen: v7x
topology: tpu7x:2x2x1
jax: 0.10.0
libtpu: 0.0.40
codegen_flags: <defaults>
</compile_context>

<pallas_src>
import functools

import jax
import jax.numpy as jnp
from jax.experimental import pallas as pl
from jax.experimental.pallas import tpu as pltpu


def _pad_to(v, m):
    return ((v + m - 1) // m) * m


def _padded_bytes(shape, dtype):
    """Rough VMEM footprint of an array, padding the minor two dims to (8,128)."""
    shape = tuple(int(s) for s in shape)
    if len(shape) == 1:
        shape = (1,) + shape
    lead = 1
    for d in shape[:-2]:
        lead *= d
    r, c = shape[-2], shape[-1]
    return lead * _pad_to(r, 8) * _pad_to(c, 128) * jnp.dtype(dtype).itemsize


def _se_local_kernel(x_ref, w1a_ref, w2a_ref, w1m_ref, w2m_ref, o_ref,
                     psum_ref, pmax_ref, scale_ref, *, c_chunk):
    # x_ref / o_ref: (Bt, C, HW)  -- native NCHW view, spatial dim on lanes.
    # Weights (pre-transposed, tiny, f32): w1*: (C, Cr), w2*: (Cr, C).
    bt, C, HW = x_ref.shape
    inv_hw = 1.0 / float(HW)

    # ---- Pass 1: fused avg+max squeeze, streamed one image / C-chunk at a
    # time so only ~c_chunk*HW elements are live in vregs (no block spill). ----
    @pl.loop(0, bt, unroll=True)
    def _pool(i):
        for c0 in range(0, C, c_chunk):
            xi = x_ref[pl.ds(i, 1), c0:c0 + c_chunk, :].astype(jnp.float32)  # (1, cc, HW)
            psum_ref[pl.ds(i, 1), c0:c0 + c_chunk] = jnp.sum(xi, axis=-1)    # (1, cc)
            pmax_ref[pl.ds(i, 1), c0:c0 + c_chunk] = jnp.max(xi, axis=-1)

    p_avg = psum_ref[...] * inv_hw          # (Bt, C) f32
    p_max = pmax_ref[...]                   # (Bt, C) f32

    # ---- Excitation: batched tiny MLPs on the MXU, f32 accumulation. ----
    h_a = jnp.maximum(
        jnp.dot(p_avg, w1a_ref[...], preferred_element_type=jnp.float32), 0.0)
    s_a = jax.nn.sigmoid(
        jnp.dot(h_a, w2a_ref[...], preferred_element_type=jnp.float32))
    h_m = jnp.maximum(
        jnp.dot(p_max, w1m_ref[...], preferred_element_type=jnp.float32), 0.0)
    s_m = jax.nn.sigmoid(
        jnp.dot(h_m, w2m_ref[...], preferred_element_type=jnp.float32))
    # x*s_avg + x*s_max == x * (s_avg + s_max)
    scale_ref[...] = s_a + s_m              # (Bt, C) f32

    # ---- Pass 2: scale & store (lane-dense over HW); f32 math, one cast. ----
    @pl.loop(0, bt, unroll=True)
    def _apply(i):
        for c0 in range(0, C, c_chunk):
            xi = x_ref[pl.ds(i, 1), c0:c0 + c_chunk, :].astype(jnp.float32)  # (1, cc, HW)
            sc = scale_ref[pl.ds(i, 1), c0:c0 + c_chunk][:, :, None]         # (1, cc, 1)
            o_ref[pl.ds(i, 1), c0:c0 + c_chunk, :] = (xi * sc).astype(o_ref.dtype)


@functools.partial(jax.jit, static_argnames=("compute_dtype", "donate_input"))
def se_layer_local(x, w1_avg, w2_avg, w1_max, w2_max, *,
                   compute_dtype=None, donate_input=False):
    """SELayer_Local forward.  x: (B, C, H, W).  Weights use the PyTorch
    nn.Linear convention (no bias): w1_*: (C//r, C), w2_*: (C, C//r).
    compute_dtype=jnp.bfloat16 halves HBM traffic (looser numerics);
    donate_input=True aliases x's HBM buffer to the output (caller must donate)."""
    B, C, H, W = x.shape
    HW = H * W
    Cr = w1_avg.shape[0]
    cdtype = jnp.dtype(compute_dtype) if compute_dtype is not None else jnp.dtype(x.dtype)
    itemsize = cdtype.itemsize

    # Native NCHW layout: free contiguous reshape, no slab transposes.
    x_r = x.reshape(B, C, HW).astype(cdtype)

    # Tiny weights: pre-transpose (negligible bytes) so the kernel runs plain
    # row-major GEMMs; keep them in f32 regardless of the activation dtype.
    w1a_t = w1_avg.T.astype(jnp.float32)    # (C, Cr)
    w2a_t = w2_avg.T.astype(jnp.float32)    # (Cr, C)
    w1m_t = w1_max.T.astype(jnp.float32)
    w2m_t = w2_max.T.astype(jnp.float32)

    # --- Per-generation VMEM budget (v5e/v6e: 128 MiB, v7x: 64 MiB/TC). ---
    try:
        vmem_cap = int(pltpu.get_tpu_info().vmem_capacity_bytes)
    except Exception:
        vmem_cap = 64 << 20                 # conservative fallback (v7x-sized)
    big_vmem = vmem_cap >= (100 << 20)
    target_block_bytes = (6 << 20) if big_vmem else (2 << 20)
    vmem_cap_limit = min(vmem_cap * 3 // 4, (96 << 20) if big_vmem else (48 << 20))

    img_bytes = _padded_bytes((C, HW), cdtype)
    w_bytes = sum(_padded_bytes(w.shape, jnp.float32)
                  for w in (w1a_t, w2a_t, w1m_t, w2m_t))

    def vmem_need(bt):
        # 2x input + 2x output pipeline buffers + double-buffered weights +
        # scratch + compiler slack.
        return (4 * bt * img_bytes + 2 * w_bytes
                + 3 * _padded_bytes((bt, C), jnp.float32) + (2 << 20))

    divs = [d for d in range(1, B + 1) if B % d == 0]
    ok = [d for d in divs if vmem_need(d) <= vmem_cap_limit]
    if not ok:
        # TODO(synk): add a two-pass spatial (H*W) split for single images whose
        # (C, H*W) slab does not fit the per-core VMEM budget (v7x: 64 MiB).
        raise ValueError("SELayer_Local Pallas kernel: a single image does not fit VMEM")
    fit_tgt = [d for d in ok if d * img_bytes <= target_block_bytes] or [min(ok)]
    multi = [d for d in fit_tgt if B // d >= 2]   # >= 2 grid steps -> both v7x TCs busy
    Bt = max(multi) if multi else max(fit_tgt)    # (B == 1: single step, unavoidable)
    grid = (B // Bt,)

    vmem_limit = int(min(max(vmem_need(Bt) + (6 << 20), 16 << 20), vmem_cap_limit))

    # In-kernel streaming chunk over C: bound the per-iteration live set to
    # ~64 KiB of f32 (16 vregs); degenerates to the full C for small images.
    divs_c = [c for c in range(1, C + 1) if C % c == 0 and (c % 8 == 0 or c == C)]
    fits_c = [c for c in divs_c if c * HW * 4 <= (64 << 10)]
    c_chunk = max(fits_c) if fits_c else min(divs_c)

    cost = pl.CostEstimate(
        flops=4 * B * C * HW + 8 * B * C * Cr,     # pooling + scale + tiny MLPs
        transcendentals=2 * B * C,                 # two sigmoids per channel
        bytes_accessed=2 * B * C * HW * itemsize + 4 * C * Cr * 4,
    )

    out = pl.pallas_call(
        functools.partial(_se_local_kernel, c_chunk=c_chunk),
        out_shape=jax.ShapeDtypeStruct((B, C, HW), cdtype),
        grid_spec=pltpu.PrefetchScalarGridSpec(
            num_scalar_prefetch=0,
            grid=grid,
            in_specs=[
                pl.BlockSpec((Bt, C, HW), lambda g: (g, 0, 0)),
                pl.BlockSpec((C, Cr), lambda g: (0, 0)),
                pl.BlockSpec((Cr, C), lambda g: (0, 0)),
                pl.BlockSpec((C, Cr), lambda g: (0, 0)),
                pl.BlockSpec((Cr, C), lambda g: (0, 0)),
            ],
            out_specs=pl.BlockSpec((Bt, C, HW), lambda g: (g, 0, 0)),
            scratch_shapes=[
                pltpu.VMEM((Bt, C), jnp.float32),   # running sum
                pltpu.VMEM((Bt, C), jnp.float32),   # running max
                pltpu.VMEM((Bt, C), jnp.float32),   # per-(b, c) scale
            ],
        ),
        compiler_params=pltpu.CompilerParams(
            dimension_semantics=("parallel",),
            vmem_limit_bytes=vmem_limit,
        ),
        cost_estimate=cost,
        input_output_aliases={0: 0} if donate_input else {},
    )(x_r, w1a_t, w2a_t, w1m_t, w2m_t)

    return out.reshape(B, C, H, W)


def _reference(x, w1_avg, w2_avg, w1_max, w2_max):
    p_avg = jnp.mean(x, axis=(2, 3))                               # (B, C)
    p_max = jnp.max(x, axis=(2, 3))                                # (B, C)
    s_avg = jax.nn.sigmoid(jnp.maximum(p_avg @ w1_avg.T, 0.0) @ w2_avg.T)
    s_max = jax.nn.sigmoid(jnp.maximum(p_max @ w1_max.T, 0.0) @ w2_max.T)
    return x * s_avg[:, :, None, None] + x * s_max[:, :, None, None]


if __name__ == "__main__":
    B, C, H, W = 4, 64, 16, 16
    reduction = 16
    Cr = C // reduction

    key = jax.random.PRNGKey(0)
    kx, k1, k2, k3, k4 = jax.random.split(key, 5)

    x = jax.random.normal(kx, (B, C, H, W), dtype=jnp.float32)
    # deterministic synthetic params (PyTorch Linear weight shapes, no bias)
    w1_avg = jax.random.normal(k1, (Cr, C), dtype=jnp.float32) * 0.1
    w2_avg = jax.random.normal(k2, (C, Cr), dtype=jnp.float32) * 0.1
    w1_max = jax.random.normal(k3, (Cr, C), dtype=jnp.float32) * 0.1
    w2_max = jax.random.normal(k4, (C, Cr), dtype=jnp.float32) * 0.1

    ref = _reference(x, w1_avg, w2_avg, w1_max, w2_max)

    # f32 path: matches the PyTorch module's numerics.
    out = jax.block_until_ready(se_layer_local(x, w1_avg, w2_avg, w1_max, w2_max))
    assert out.shape == (B, C, H, W) and out.dtype == jnp.float32
    assert jnp.allclose(out, ref, atol=1e-4, rtol=1e-4)

    # bf16 I/O path: the main bandwidth lever for the mem-bound op.
    out_bf16 = jax.block_until_ready(
        se_layer_local(x, w1_avg, w2_avg, w1_max, w2_max, compute_dtype=jnp.bfloat16))
    assert out_bf16.dtype == jnp.bfloat16
    assert jnp.allclose(out_bf16.astype(jnp.float32), ref, atol=5e-2, rtol=5e-2)

    print("KERNEL_OK")
</pallas_src>

<mosaic_0001>
module attributes {stable_mosaic.version = 11 : i64} {
  func.func @_se_local_kernel(%arg0: i32, %arg1: memref<2x64x256xf32, #tpu.memory_space<vmem>>, %arg2: memref<64x4xf32, #tpu.memory_space<vmem>>, %arg3: memref<4x64xf32, #tpu.memory_space<vmem>>, %arg4: memref<64x4xf32, #tpu.memory_space<vmem>>, %arg5: memref<4x64xf32, #tpu.memory_space<vmem>>, %arg6: memref<2x64x256xf32, #tpu.memory_space<vmem>>, %arg7: memref<2x64xf32, #tpu.memory_space<vmem>>, %arg8: memref<2x64xf32, #tpu.memory_space<vmem>>, %arg9: memref<2x64xf32, #tpu.memory_space<vmem>>) attributes {dimension_semantics = [#tpu.dimension_semantics<parallel>], iteration_bounds = array<i64: 2>, scalar_prefetch = 0 : i64, scratch_operands = 3 : i64, tpu.core_type = #tpu.core_type<tc>, window_params = [{transform_indices = @transform_0, window_bounds = array<i64: 2, 64, 256>}, {pipeline_mode = #tpu.pipeline_mode<synchronous>, transform_indices = @transform_1, window_bounds = array<i64: 64, 4>}, {pipeline_mode = #tpu.pipeline_mode<synchronous>, transform_indices = @transform_2, window_bounds = array<i64: 4, 64>}, {pipeline_mode = #tpu.pipeline_mode<synchronous>, transform_indices = @transform_3, window_bounds = array<i64: 64, 4>}, {pipeline_mode = #tpu.pipeline_mode<synchronous>, transform_indices = @transform_4, window_bounds = array<i64: 4, 64>}, {transform_indices = @transform_5, window_bounds = array<i64: 2, 64, 256>}]} {
    %c0_i32 = arith.constant 0 : i32
    %c1_i32 = arith.constant 1 : i32
    %0 = arith.muli %c0_i32, %c1_i32 : i32
    %c0_i32_0 = arith.constant 0 : i32
    %1 = arith.addi %c0_i32_0, %0 : i32
    %2 = arith.index_cast %1 : i32 to index
    %c0 = arith.constant 0 : index
    %c0_1 = arith.constant 0 : index
    %3 = vector.load %arg1[%2, %c0, %c0_1] : memref<2x64x256xf32, #tpu.memory_space<vmem>>, vector<1x64x256xf32>
    %cst = arith.constant dense<0.000000e+00> : vector<1x64xf32>
    %4 = vector.multi_reduction <add>, %3, %cst [2] : vector<1x64x256xf32> to vector<1x64xf32>
    %5 = arith.index_cast %1 : i32 to index
    %c0_2 = arith.constant 0 : index
    %6 = vector.load %arg7[%5, %c0_2] : memref<2x64xf32, #tpu.memory_space<vmem>>, vector<1x64xf32>
    tpu.vector_store %arg7[%5, %c0_2], %4 {strides = array<i32>} : memref<2x64xf32, #tpu.memory_space<vmem>>, vector<1x64xf32>,
    %cst_3 = arith.constant dense<0xFF800000> : vector<1x64xf32>
    %7 = vector.multi_reduction <maximumf>, %3, %cst_3 [2] : vector<1x64x256xf32> to vector<1x64xf32>
    %8 = arith.index_cast %1 : i32 to index
    %c0_4 = arith.constant 0 : index
    %9 = vector.load %arg8[%8, %c0_4] : memref<2x64xf32, #tpu.memory_space<vmem>>, vector<1x64xf32>
    tpu.vector_store %arg8[%8, %c0_4], %7 {strides = array<i32>} : memref<2x64xf32, #tpu.memory_space<vmem>>, vector<1x64xf32>,
    %c1_i32_5 = arith.constant 1 : i32
    %c1_i32_6 = arith.constant 1 : i32
    %10 = arith.muli %c1_i32_5, %c1_i32_6 : i32
    %c0_i32_7 = arith.constant 0 : i32
    %11 = arith.addi %c0_i32_7, %10 : i32
    %12 = arith.index_cast %11 : i32 to index
    %c0_8 = arith.constant 0 : index
    %c0_9 = arith.constant 0 : index
    %13 = vector.load %arg1[%12, %c0_8, %c0_9] : memref<2x64x256xf32, #tpu.memory_space<vmem>>, vector<1x64x256xf32>
    %cst_10 = arith.constant dense<0.000000e+00> : vector<1x64xf32>
    %14 = vector.multi_reduction <add>, %13, %cst_10 [2] : vector<1x64x256xf32> to vector<1x64xf32>
    %15 = arith.index_cast %11 : i32 to index
    %c0_11 = arith.constant 0 : index
    %16 = vector.load %arg7[%15, %c0_11] : memref<2x64xf32, #tpu.memory_space<vmem>>, vector<1x64xf32>
    tpu.vector_store %arg7[%15, %c0_11], %14 {strides = array<i32>} : memref<2x64xf32, #tpu.memory_space<vmem>>, vector<1x64xf32>,
    %cst_12 = arith.constant dense<0xFF800000> : vector<1x64xf32>
    %17 = vector.multi_reduction <maximumf>, %13, %cst_12 [2] : vector<1x64x256xf32> to vector<1x64xf32>
    %18 = arith.index_cast %11 : i32 to index
    %c0_13 = arith.constant 0 : index
    %19 = vector.load %arg8[%18, %c0_13] : memref<2x64xf32, #tpu.memory_space<vmem>>, vector<1x64xf32>
    tpu.vector_store %arg8[%18, %c0_13], %17 {strides = array<i32>} : memref<2x64xf32, #tpu.memory_space<vmem>>, vector<1x64xf32>,
    %c2_i32 = arith.constant 2 : i32
    %c0_14 = arith.constant 0 : index
    %c0_15 = arith.constant 0 : index
    %20 = vector.load %arg7[%c0_14, %c0_15] : memref<2x64xf32, #tpu.memory_space<vmem>>, vector<2x64xf32>
    %cst_16 = arith.constant 3.906250e-03 : f32
    %21 = vector.broadcast %cst_16 : f32 to vector<2x64xf32>
    %22 = arith.mulf %20, %21 : vector<2x64xf32>
    %c0_17 = arith.constant 0 : index
    %c0_18 = arith.constant 0 : index
    %23 = vector.load %arg8[%c0_17, %c0_18] : memref<2x64xf32, #tpu.memory_space<vmem>>, vector<2x64xf32>
    %c0_19 = arith.constant 0 : index
    %c0_20 = arith.constant 0 : index
    %24 = vector.load %arg2[%c0_19, %c0_20] : memref<64x4xf32, #tpu.memory_space<vmem>>, vector<64x4xf32>
    %cst_21 = arith.constant dense<0.000000e+00> : vector<2x4xf32>
    %25 = tpu.matmul %22, %24, %cst_21 {dimension_numbers = #tpu.dot_dimension_numbers<[1], [0], [0], [1], [0, 0, 1, 1], [], []>} : vector<2x64xf32>, vector<64x4xf32>, vector<2x4xf32> -> vector<2x4xf32>
    %cst_22 = arith.constant 0.000000e+00 : f32
    %26 = vector.broadcast %cst_22 : f32 to vector<2x4xf32>
    %27 = arith.maximumf %25, %26 : vector<2x4xf32>
    %c0_23 = arith.constant 0 : index
    %c0_24 = arith.constant 0 : index
    %28 = vector.load %arg3[%c0_23, %c0_24] : memref<4x64xf32, #tpu.memory_space<vmem>>, vector<4x64xf32>
    %cst_25 = arith.constant dense<0.000000e+00> : vector<2x64xf32>
    %29 = tpu.matmul %27, %28, %cst_25 {dimension_numbers = #tpu.dot_dimension_numbers<[1], [0], [0], [1], [0, 0, 1, 1], [], []>} : vector<2x4xf32>, vector<4x64xf32>, vector<2x64xf32> -> vector<2x64xf32>
    %30 = arith.negf %29 : vector<2x64xf32>
    %31 = math.exp %30 : vector<2x64xf32>
    %cst_26 = arith.constant 1.000000e+00 : f32
    %32 = vector.broadcast %cst_26 : f32 to vector<2x64xf32>
    %33 = arith.addf %32, %31 : vector<2x64xf32>
    %34 = arith.divf %32, %33 : vector<2x64xf32>
    %c0_27 = arith.constant 0 : index
    %c0_28 = arith.constant 0 : index
    %35 = vector.load %arg4[%c0_27, %c0_28] : memref<64x4xf32, #tpu.memory_space<vmem>>, vector<64x4xf32>
    %cst_29 = arith.constant dense<0.000000e+00> : vector<2x4xf32>
    %36 = tpu.matmul %23, %35, %cst_29 {dimension_numbers = #tpu.dot_dimension_numbers<[1], [0], [0], [1], [0, 0, 1, 1], [], []>} : vector<2x64xf32>, vector<64x4xf32>, vector<2x4xf32> -> vector<2x4xf32>
    %cst_30 = arith.constant 0.000000e+00 : f32
    %37 = vector.broadcast %cst_30 : f32 to vector<2x4xf32>
    %38 = arith.maximumf %36, %37 : vector<2x4xf32>
    %c0_31 = arith.constant 0 : index
    %c0_32 = arith.constant 0 : index
    %39 = vector.load %arg5[%c0_31, %c0_32] : memref<4x64xf32, #tpu.memory_space<vmem>>, vector<4x64xf32>
    %cst_33 = arith.constant dense<0.000000e+00> : vector<2x64xf32>
    %40 = tpu.matmul %38, %39, %cst_33 {dimension_numbers = #tpu.dot_dimension_numbers<[1], [0], [0], [1], [0, 0, 1, 1], [], []>} : vector<2x4xf32>, vector<4x64xf32>, vector<2x64xf32> -> vector<2x64xf32>
    %41 = arith.negf %40 : vector<2x64xf32>
    %42 = math.exp %41 : vector<2x64xf32>
    %cst_34 = arith.constant 1.000000e+00 : f32
    %43 = vector.broadcast %cst_34 : f32 to vector<2x64xf32>
    %44 = arith.addf %43, %42 : vector<2x64xf32>
    %45 = arith.divf %43, %44 : vector<2x64xf32>
    %46 = arith.addf %34, %45 : vector<2x64xf32>
    %c0_35 = arith.constant 0 : index
    %c0_36 = arith.constant 0 : index
    %47 = vector.load %arg9[%c0_35, %c0_36] : memref<2x64xf32, #tpu.memory_space<vmem>>, vector<2x64xf32>
    tpu.vector_store %arg9[%c0_35, %c0_36], %46 {strides = array<i32>} : memref<2x64xf32, #tpu.memory_space<vmem>>, vector<2x64xf32>,
    %c0_i32_37 = arith.constant 0 : i32
    %c1_i32_38 = arith.constant 1 : i32
    %48 = arith.muli %c0_i32_37, %c1_i32_38 : i32
    %c0_i32_39 = arith.constant 0 : i32
    %49 = arith.addi %c0_i32_39, %48 : i32
    %50 = arith.index_cast %49 : i32 to index
    %c0_40 = arith.constant 0 : index
    %c0_41 = arith.constant 0 : index
    %51 = vector.load %arg1[%50, %c0_40, %c0_41] : memref<2x64x256xf32, #tpu.memory_space<vmem>>, vector<1x64x256xf32>
    %52 = arith.index_cast %49 : i32 to index
    %c0_42 = arith.constant 0 : index
    %53 = vector.load %arg9[%52, %c0_42] : memref<2x64xf32, #tpu.memory_space<vmem>>, vector<1x64xf32>
    %54 = vector.shape_cast %53 : vector<1x64xf32> to vector<1x64x1xf32>
    %55 = vector.broadcast %54 : vector<1x64x1xf32> to vector<1x64x256xf32>
    %56 = arith.mulf %51, %55 : vector<1x64x256xf32>
    %57 = arith.index_cast %49 : i32 to index
    %c0_43 = arith.constant 0 : index
    %c0_44 = arith.constant 0 : index
    %58 = vector.load %arg6[%57, %c0_43, %c0_44] : memref<2x64x256xf32, #tpu.memory_space<vmem>>, vector<1x64x256xf32>
    tpu.vector_store %arg6[%57, %c0_43, %c0_44], %56 {strides = array<i32>} : memref<2x64x256xf32, #tpu.memory_space<vmem>>, vector<1x64x256xf32>,
    %c1_i32_45 = arith.constant 1 : i32
    %c1_i32_46 = arith.constant 1 : i32
    %59 = arith.muli %c1_i32_45, %c1_i32_46 : i32
    %c0_i32_47 = arith.constant 0 : i32
    %60 = arith.addi %c0_i32_47, %59 : i32
    %61 = arith.index_cast %60 : i32 to index
    %c0_48 = arith.constant 0 : index
    %c0_49 = arith.constant 0 : index
    %62 = vector.load %arg1[%61, %c0_48, %c0_49] : memref<2x64x256xf32, #tpu.memory_space<vmem>>, vector<1x64x256xf32>
    %63 = arith.index_cast %60 : i32 to index
    %c0_50 = arith.constant 0 : index
    %64 = vector.load %arg9[%63, %c0_50] : memref<2x64xf32, #tpu.memory_space<vmem>>, vector<1x64xf32>
    %65 = vector.shape_cast %64 : vector<1x64xf32> to vector<1x64x1xf32>
    %66 = vector.broadcast %65 : vector<1x64x1xf32> to vector<1x64x256xf32>
    %67 = arith.mulf %62, %66 : vector<1x64x256xf32>
    %68 = arith.index_cast %60 : i32 to index
    %c0_51 = arith.constant 0 : index
    %c0_52 = arith.constant 0 : index
    %69 = vector.load %arg6[%68, %c0_51, %c0_52] : memref<2x64x256xf32, #tpu.memory_space<vmem>>, vector<1x64x256xf32>
    tpu.vector_store %arg6[%68, %c0_51, %c0_52], %67 {strides = array<i32>} : memref<2x64x256xf32, #tpu.memory_space<vmem>>, vector<1x64x256xf32>,
    %c2_i32_53 = arith.constant 2 : i32
    return
  }
  func.func @transform_0(%arg0: i32) -> (i32, i32, i32) {
    %c0_i32 = arith.constant 0 : i32
    %c0_i32_0 = arith.constant 0 : i32
    %c0_i32_1 = arith.constant 0 : i32
    return %arg0, %c0_i32, %c0_i32_0 : i32, i32, i32
  }
  func.func @transform_1(%arg0: i32) -> (i32, i32) {
    %c0_i32 = arith.constant 0 : i32
    %c0_i32_0 = arith.constant 0 : i32
    %c0_i32_1 = arith.constant 0 : i32
    return %c0_i32, %c0_i32_0 : i32, i32
  }
  func.func @transform_2(%arg0: i32) -> (i32, i32) {
    %c0_i32 = arith.constant 0 : i32
    %c0_i32_0 = arith.constant 0 : i32
    %c0_i32_1 = arith.constant 0 : i32
    return %c0_i32, %c0_i32_0 : i32, i32
  }
  func.func @transform_3(%arg0: i32) -> (i32, i32) {
    %c0_i32 = arith.constant 0 : i32
    %c0_i32_0 = arith.constant 0 : i32
    %c0_i32_1 = arith.constant 0 : i32
    return %c0_i32, %c0_i32_0 : i32, i32
  }
  func.func @transform_4(%arg0: i32) -> (i32, i32) {
    %c0_i32 = arith.constant 0 : i32
    %c0_i32_0 = arith.constant 0 : i32
    %c0_i32_1 = arith.constant 0 : i32
    return %c0_i32, %c0_i32_0 : i32, i32
  }
  func.func @transform_5(%arg0: i32) -> (i32, i32, i32) {
    %c0_i32 = arith.constant 0 : i32
    %c0_i32_0 = arith.constant 0 : i32
    %c0_i32_1 = arith.constant 0 : i32
    return %arg0, %c0_i32, %c0_i32_0 : i32, i32, i32
  }
}

</mosaic_0001>

<bundles_post_ra>
// kernel: se_layer_local.1
= control target key start
LH: loop header
LB: loop body
LE: loop exit
PB: predicated region body
PF: predicated region fallthrough
CT: control target
= control target key end

     0   :  { %s1368_s18 = smov 0   ;;  %s1778_s0 = inlined_call_operand.vmem [shape: f32[4,64,256], index: 0, kind: input, shape index: {}]   ;;  %s1779_s1 = inlined_call_operand.vmem [shape: f32[64,4], index: 1, kind: input, shape index: {}]   ;;  %s1780_s2 = inlined_call_operand.vmem [shape: f32[4,64], index: 2, kind: input, shape index: {}]   ;;  %s1781_s3 = inlined_call_operand.vmem [shape: f32[64,4], index: 3, kind: input, shape index: {}]   ;;  %s1782_s4 = inlined_call_operand.vmem [shape: f32[4,64], index: 4, kind: input, shape index: {}]   ;;  %s1783_s5 = inlined_call_operand.vmem [shape: f32[4,64,256], index: 5, kind: output, shape index: {}]  }
   0x1 LB: > { %s1141_s19 = sadd.s32 4294967295, %s1333_s18   ;;  %p1145_p0 = scmp.ge.s32.totalorder %s1333_s18, 1  ;;  %s1333_s18 = sphi %s1368_s18, %s15_s18  }
   0x2   : > { %p189_p1 = scmp.lt.s32.totalorder %s1333_s18, 3 }
   0x4   : > { %p190_p2 = pnand %p1145_p0, %p189_p1 }
   0x6   : > { %193 = sbr.rel (%p190_p2) target bundleno = 1048 (0x418), region = 40 }
   0xd   : > { %s1146_s20 = sshll.u32 %s1141_s19, 1  ;;  %v578_v48 = vld [vmem:[%s1779_s1] sm:$0xff]  ;;  %v579_v49 = vld [vmem:[%s1779_s1 + $0x8] sm:$0xff]  ;;  %v1784_v51 = vmov 0.0|0.0   ;;  %v580_v52 = vld [vmem:[%s1779_s1 + $0x10] sm:$0xff]  ;;  %vm1336_vm0 = vmmov 0  }
   0xe   : > { %p220_p3 = scmp.lt.s32.totalorder %s1146_s20, 3  ;;  %v1285_v50 = vpack.c.bf16 %v579_v49, %v578_v48  ;;  %1284 = vmatprep.subr.bf16.mxu0 %v1784_v51  ;;  %v581_v53 = vld [vmem:[%s1779_s1 + $0x18] sm:$0xff]  ;;  %v582_v55 = vld [vmem:[%s1779_s1 + $0x20] sm:$0xff]  ;;  %v583_v56 = vld [vmem:[%s1779_s1 + $0x28] sm:$0xff]  ;;  %v1786_v60 = vmov 0.0   ;;  %vm292_vm1 = vcmask 130112  }
   0xf   : > { %v1288_v54 = vpack.c.bf16 %v581_v53, %v580_v52  ;;  %v584_v57 = vld [vmem:[%s1779_s1 + $0x30] sm:$0xff]  ;;  %v1291_v58 = vpack.c.bf16 %v583_v56, %v582_v55  ;;  %v585_v59 = vld [vmem:[%s1779_s1 + $0x38] sm:$0xff]  ;;  %1252 = vmatprep.mubr.msk.f32.mxu0 %vm1336_vm0, %v1786_v60  ;;  %1255 = vmatprep.subr.mxu1 %v1786_v60  ;;  %vm299_vm2 = vcmask 195712   ;;  %vm306_vm3 = vcmask 261312  }
  0x10   : > { %s1794_s20 = smov (!%p220_p3, %s1146_s20), 3  ;;  %1286 = vmatpush3.bf16.msra.mxu0 %v1285_v50  ;;  %1257 = vmatprep.mubr.msk.f32.mxu1 %vm1336_vm0, %v1786_v60  ;;  %v1294_v61 = vpack.c.bf16 %v585_v59, %v584_v57  ;;  %v281_v50 = vlaneseq  ;;  %vm313_vm4 = vcmask 326912   ;;  %vm320_vm5 = vcmask 392512  }
  0x11   : > { %s1212_s21 = sshll.u32 %s1794_s20, 7  ;;  %1287 = vmatprep.subr.bf16.mxu0 %v1784_v51  ;;  %vm327_vm6 = vcmask 458112   ;;  %vm334_vm7 = vcmask 523712   ;;  %vm337_vm8 = vcmask 516096   ;;  %vm586_vm9 = vcmask 523264  }
  0x12   : > { %s1384_s24 = scalar_lea.vmem %s1778_s0, %s1212_s21  ;;  %v284_v59 = vshrl.u32 %v281_v50, 7  ;;  %vm666_vm10 = vcmask 1043456   ;;  %vm662_vm11 = vcmask 31744   ;;  %vm912_vm12 = vcmask 517120   ;;  %s1709_s16 = scalar_lea.vmem %s1783_s5, %s1212_s21 }
  0x13   : > { %v1387_v0 = vld [vmem:[%s1384_s24 + $0x80] sm:$0xff]  ;;  %v1390_v1 = vld [vmem:[%s1384_s24 + $0x88] sm:$0xff]  ;;  %v1401_v5 = vld [vmem:[%s1384_s24 + $0x90] sm:$0xff] }
  0x14   : > { %v1393_v2 = vld [vmem:[%s1384_s24] sm:$0xff]  ;;  %v429_v3 = vadd.f32 %v1390_v1, %v1387_v0  ;;  %v1398_v4 = vld [vmem:[%s1384_s24 + $0x8] sm:$0xff]  ;;  %v1404_v6 = vld [vmem:[%s1384_s24 + $0x98] sm:$0xff]  ;;  %1289 = vmatpush3.bf16.msra.mxu0 %v1288_v54  ;;  %v282_v54 = vand.u32 127, %v281_v50 }
  0x15   : > { %v249_v7 = vadd.f32 %v1398_v4, %v1393_v2  ;;  %v1409_v8 = vld [vmem:[%s1384_s24 + $0x10] sm:$0xff]  ;;  %v1412_v9 = vld [vmem:[%s1384_s24 + $0x18] sm:$0xff]  ;;  %v432_v10 = vadd.f32 %v1404_v6, %v1401_v5  ;;  %v1419_v12 = vld [vmem:[%s1384_s24 + $0xa0] sm:$0xff]  ;;  %1290 = vmatprep.subr.bf16.mxu0 %v1784_v51  ;;  %v339_v63 = vmax.f32 %v1393_v2, %v1398_v4 }
  0x16   : > { %430 = vadd.xlane.f32.xlu1 %v429_v3  ;;  %v252_v11 = vadd.f32 %v1412_v9, %v1409_v8  ;;  %v1422_v13 = vld [vmem:[%s1384_s24 + $0xa8] sm:$0xff]  ;;  %v1425_v14 = vld [vmem:[%s1384_s24 + $0x20] sm:$0xff]  ;;  %v1435_v18 = vld [vmem:[%s1384_s24 + $0xb0] sm:$0xff]  ;;  %v342_v62 = vmax.f32 %v1409_v8, %v1412_v9  ;;  %v505_v3 = vmax.f32 %v1401_v5, %v1404_v6  ;;  %v287_v56 = vadd.s32 4294967288, %v282_v54 }
  0x17   : > { %250 = vadd.xlane.f32.xlu0 %v249_v7  ;;  %v1428_v15 = vld [vmem:[%s1384_s24 + $0x28] sm:$0xff]  ;;  %v435_v16 = vadd.f32 %v1422_v13, %v1419_v12  ;;  %v1438_v19 = vld [vmem:[%s1384_s24 + $0xb8] sm:$0xff]  ;;  %v1441_v20 = vld [vmem:[%s1384_s24 + $0x30] sm:$0xff]  ;;  %v502_v7 = vmax.f32 %v1387_v0, %v1390_v1 }
  0x18   : > { %v255_v17 = vadd.f32 %v1428_v15, %v1425_v14  ;;  %v1444_v21 = vld [vmem:[%s1384_s24 + $0x38] sm:$0xff]  ;;  %v438_v22 = vadd.f32 %v1438_v19, %v1435_v18  ;;  %v1451_v24 = vld [vmem:[%s1384_s24 + $0xc0] sm:$0xff]  ;;  %v1454_v25 = vld [vmem:[%s1384_s24 + $0xc8] sm:$0xff]  ;;  %1292 = vmatpush3.bf16.msra.mxu0 %v1291_v58  ;;  %v294_v58 = vadd.s32 4294967280, %v282_v54 }
  0x19   : > { %v258_v23 = vadd.f32 %v1444_v21, %v1441_v20  ;;  %v1457_v26 = vld [vmem:[%s1384_s24 + $0x40] sm:$0xff]  ;;  %v1460_v27 = vld [vmem:[%s1384_s24 + $0x48] sm:$0xff]  ;;  %v441_v28 = vadd.f32 %v1454_v25, %v1451_v24  ;;  %v1467_v30 = vld [vmem:[%s1384_s24 + $0xd0] sm:$0xff]  ;;  %1293 = vmatprep.subr.bf16.mxu0 %v1784_v51 }
  0x1a   : > { %433 = vadd.xlane.f32.xlu1 %v432_v10  ;;  %v261_v29 = vadd.f32 %v1460_v27, %v1457_v26  ;;  %v1470_v31 = vld [vmem:[%s1384_s24 + $0xd8] sm:$0xff]  ;;  %v1473_v32 = vld [vmem:[%s1384_s24 + $0x50] sm:$0xff]  ;;  %v1483_v36 = vld [vmem:[%s1384_s24 + $0xe0] sm:$0xff]  ;;  %v508_v10 = vmax.f32 %v1419_v12, %v1422_v13 }
  0x1b   : > { %253 = vadd.xlane.f32.xlu0 %v252_v11  ;;  %v1476_v33 = vld [vmem:[%s1384_s24 + $0x58] sm:$0xff]  ;;  %v444_v34 = vadd.f32 %v1470_v31, %v1467_v30  ;;  %v1486_v37 = vld [vmem:[%s1384_s24 + $0xe8] sm:$0xff]  ;;  %v1489_v38 = vld [vmem:[%s1384_s24 + $0x60] sm:$0xff]  ;;  %v345_v11 = vmax.f32 %v1425_v14, %v1428_v15 }
  0x1c   : > { %v264_v35 = vadd.f32 %v1476_v33, %v1473_v32  ;;  %v1492_v39 = vld [vmem:[%s1384_s24 + $0x68] sm:$0xff]  ;;  %v447_v40 = vadd.f32 %v1486_v37, %v1483_v36  ;;  %v1499_v42 = vld [vmem:[%s1384_s24 + $0xf0] sm:$0xff]  ;;  %v1502_v43 = vld [vmem:[%s1384_s24 + $0xf8] sm:$0xff]  ;;  %1295 = vmatpush3.bf16.msra.mxu0 %v1294_v61  ;;  %v301_v61 = vadd.s32 4294967272, %v282_v54 }
  0x1d   : > { %v267_v41 = vadd.f32 %v1492_v39, %v1489_v38  ;;  %1789 = vst [vmem:[#allocation5_spill] sm:$0xff] %v1502_v43  ;;  %v1505_v44 = vld [vmem:[%s1384_s24 + $0x70] sm:$0xff]  ;;  %v1508_v45 = vld [vmem:[%s1384_s24 + $0x78] sm:$0xff]  ;;  %v450_v46 = vadd.f32 %v1502_v43, %v1499_v42  ;;  %1279 = vmatprep.subr.mxu0 %v1786_v60 }
  0x1e   : > { %436 = vadd.xlane.f32.xlu1 %v435_v16  ;;  %v270_v47 = vadd.f32 %v1508_v45, %v1505_v44  ;;  %v511_v16 = vmax.f32 %v1435_v18, %v1438_v19 }
  0x1f   : > { %256 = vadd.xlane.f32.xlu0 %v255_v17  ;;  %v348_v17 = vmax.f32 %v1441_v20, %v1444_v21 }
  0x22   : > { %439 = vadd.xlane.f32.xlu1 %v438_v22  ;;  %v514_v22 = vmax.f32 %v1451_v24, %v1454_v25 }
  0x23   : > { %259 = vadd.xlane.f32.xlu0 %v258_v23  ;;  %v351_v23 = vmax.f32 %v1457_v26, %v1460_v27 }
  0x26   : > { %442 = vadd.xlane.f32.xlu1 %v441_v28  ;;  %v517_v28 = vmax.f32 %v1467_v30, %v1470_v31 }
  0x27   : > { %262 = vadd.xlane.f32.xlu0 %v261_v29  ;;  %v354_v29 = vmax.f32 %v1473_v32, %v1476_v33 }
  0x2a   : > { %445 = vadd.xlane.f32.xlu1 %v444_v34  ;;  %v520_v34 = vmax.f32 %v1483_v36, %v1486_v37 }
  0x2b   : > { %265 = vadd.xlane.f32.xlu0 %v264_v35  ;;  %v357_v35 = vmax.f32 %v1489_v38, %v1492_v39 }
  0x2e   : > { %448 = vadd.xlane.f32.xlu1 %v447_v40  ;;  %v523_v40 = vmax.f32 %v1499_v42, %v1502_v43 }
  0x2f   : > { %268 = vadd.xlane.f32.xlu0 %v267_v41  ;;  %v360_v41 = vmax.f32 %v1505_v44, %v1508_v45 }
  0x32   : > { %451 = vadd.xlane.f32.xlu1 %v450_v46 }
  0x33   : > { %271 = vadd.xlane.f32.xlu0 %v270_v47 }
  0x36   : > { %343 = vmax.xlane.f32.xlu1 %v342_v62  ;;  %v308_v62 = vadd.s32 4294967264, %v282_v54 }
  0x37   : > { %340 = vmax.xlane.f32.xlu0 %v339_v63 }
  0x3a   : > { %506 = vmax.xlane.f32.xlu1 %v505_v3  ;;  %v1580_v3 = vsub.s32 %v287_v56, %v284_v59 }
  0x3b   : > { %503 = vmax.xlane.f32.xlu0 %v502_v7 }
  0x3e   : > { %509 = vmax.xlane.f32.xlu1 %v508_v10  ;;  %v315_v10 = vadd.s32 4294967256, %v282_v54 }
  0x3f   : > { %346 = vmax.xlane.f32.xlu0 %v345_v11  ;;  %v1582_v11 = vsub.s32 %v294_v58, %v284_v59 }
  0x42   : > { %512 = vmax.xlane.f32.xlu1 %v511_v16  ;;  %v322_v16 = vadd.s32 4294967248, %v282_v54 }
  0x43   : > { %349 = vmax.xlane.f32.xlu0 %v348_v17  ;;  %v1584_v17 = vsub.s32 %v282_v54, %v284_v59 }
  0x44   : > { %v1595_v56 = vsub.s32 %v322_v16, %v284_v59 }
  0x46   : > { %515 = vmax.xlane.f32.xlu1 %v514_v22  ;;  %v1586_v22 = vsub.s32 %v301_v61, %v284_v59 }
  0x47   : > { %352 = vmax.xlane.f32.xlu0 %v351_v23  ;;  %v1588_v23 = vsub.s32 %v308_v62, %v284_v59 }
  0x4a   : > { %518 = vmax.xlane.f32.xlu1 %v517_v28 }
  0x4b   : > { %355 = vmax.xlane.f32.xlu0 %v354_v29 }
  0x4e   : > { %521 = vmax.xlane.f32.xlu1 %v520_v34  ;;  %v1591_v34 = vsub.s32 %v315_v10, %v284_v59 }
  0x4f   : > { %358 = vmax.xlane.f32.xlu0 %v357_v35 }
  0x52   : > { %524 = vmax.xlane.f32.xlu1 %v523_v40  ;;  %v329_v40 = vadd.s32 4294967240, %v282_v54 }
  0x53   : > { %361 = vmax.xlane.f32.xlu0 %v360_v41 }
  0x54   : > { %v1606_v60 = vsub.s32 %v329_v40, %v284_v59 }
  0xa3   : > { %v431_v46 = vpop.xlane.xlu1 %430 }
  0xa4   : > { %v251_v47 = vpop.xlane.xlu0 %250  ;;  %v464_v58 = vrot.slane %v431_v46, %v1584_v17 }
  0xa7   : > { %v434_v48 = vpop.xlane.xlu1 %433 }
  0xa8   : > { %v254_v49 = vpop.xlane.xlu0 %253  ;;  %v468_v29 = vrot.slane %v434_v48, %v1580_v3  ;;  %v286_v48 = vrot.slane %v251_v47, %v1584_v17 }
  0xa9   : > { %v291_v41 = vrot.slane %v254_v49, %v1580_v3 }
  0xab   : > { %v437_v52 = vpop.xlane.xlu1 %436 }
  0xac   : > { %v257_v53 = vpop.xlane.xlu0 %256  ;;  %v473_v50 = vrot.slane %v437_v52, %v1582_v11  ;;  %v469_v52 = vsel %vm292_vm1, %v468_v29, %v464_v58 }
  0xad   : > { %v298_v61 = vrot.slane %v257_v53, %v1582_v11  ;;  %v293_v53 = vsel %vm292_vm1, %v291_v41, %v286_v48 }
  0xaf   : > { %v440_v55 = vpop.xlane.xlu1 %439 }
  0xb0   : > { %v260_v57 = vpop.xlane.xlu0 %259  ;;  %v478_v62 = vrot.slane %v440_v55, %v1586_v22  ;;  %v474_v55 = vsel %vm299_vm2, %v473_v50, %v469_v52 }
  0xb1   : > { %v305_v10 = vrot.slane %v260_v57, %v1586_v22 }
  0xb2   : > { %v479_v43 = vsel %vm306_vm3, %v478_v62, %v474_v55 }
  0xb3   : > { %v443_v63 = vpop.xlane.xlu1 %442 }
  0xb4   : > { %v263_v7 = vpop.xlane.xlu0 %262  ;;  %v483_v54 = vrot.slane %v443_v63, %v1588_v23  ;;  %v300_v63 = vsel %vm299_vm2, %v298_v61, %v293_v53 }
  0xb5   : > { %v312_v16 = vrot.slane %v263_v7, %v1588_v23 }
  0xb6   : > { %v484_v59 = vsel %vm313_vm4, %v483_v54, %v479_v43 }
  0xb7   : > { %v446_v28 = vpop.xlane.xlu1 %445 }
  0xb8   : > { %v266_v35 = vpop.xlane.xlu0 %265  ;;  %v488_v51 = vrot.slane %v446_v28, %v1591_v34  ;;  %v307_v28 = vsel %vm306_vm3, %v305_v10, %v300_v63 }
  0xb9   : > { %v319_v47 = vrot.slane %v266_v35, %v1591_v34  ;;  %v314_v40 = vsel %vm313_vm4, %v312_v16, %v307_v28 }
  0xba   : > { %v489_v41 = vsel %vm320_vm5, %v488_v51, %v484_v59 }
  0xbb   : > { %v449_v49 = vpop.xlane.xlu1 %448  ;;  %v321_v58 = vsel %vm320_vm5, %v319_v47, %v314_v40 }
  0xbc   : > { %v269_v46 = vpop.xlane.xlu0 %268  ;;  %v493_v57 = vrot.slane %v449_v49, %v1595_v56  ;;  %v1790_v49 = vmov 0.0  }
  0xbd   : > { %v326_v7 = vrot.slane %v269_v46, %v1595_v56 }
  0xbe   : > { %v494_v61 = vsel %vm327_vm6, %v493_v57, %v489_v41 }
  0xbf   : > { %v452_v29 = vpop.xlane.xlu1 %451  ;;  %v328_v48 = vsel %vm327_vm6, %v326_v7, %v321_v58 }
  0xc0   : > { %v498_v35 = vrot.slane %v452_v29, %v1606_v60  ;;  %v272_v50 = vpop.xlane.xlu0 %271 }
  0xc1   : > { %v333_v62 = vrot.slane %v272_v50, %v1606_v60 }
  0xc2   : > { %v499_v43 = vsel %vm334_vm7, %v498_v35, %v494_v61 }
  0xc3   : > { %501 = vst.msk [vmem:[#allocation2 + $0x1] sm:$0x1] %vm337_vm8, %v499_v43  ;;  %v335_v10 = vsel %vm334_vm7, %v333_v62, %v328_v48  ;;  %v344_v52 = vpop.xlane.xlu1 %343 }
  0xc4   : > { %338 = vst.msk [vmem:[#allocation2] sm:$0x1] %vm337_vm8, %v335_v10  ;;  %v341_v16 = vpop.xlane.xlu0 %340  ;;  %v378_v57 = vrot.slane %v344_v52, %v1580_v3 }
  0xc5   : > { %v374_v63 = vrot.slane %v341_v16, %v1584_v17 }
  0xc7   : > { %v507_v46 = vpop.xlane.xlu1 %506  ;;  %v379_v35 = vsel %vm292_vm1, %v378_v57, %v374_v63 }
  0xc8   : > { %v504_v53 = vpop.xlane.xlu0 %503  ;;  %v541_v7 = vrot.slane %v507_v46, %v1580_v3 }
  0xc9   : > { %v537_v28 = vrot.slane %v504_v53, %v1584_v17 }
  0xcb   : > { %v575_v51 = vld [vmem:[#allocation2] sm:$0x3]  ;;  %v510_v55 = vpop.xlane.xlu1 %509  ;;  %v542_v50 = vsel %vm292_vm1, %v541_v7, %v537_v28 }
  0xcc   : > { %v576_v54 = vmul.f32 0.00390625, %v575_v51  ;;  %v347_v47 = vpop.xlane.xlu0 %346  ;;  %v546_v59 = vrot.slane %v510_v55, %v1582_v11 }
  0xcd   : > { %v383_v29 = vrot.slane %v347_v47, %v1582_v11 }
  0xce   : > { %1253 = vmatmul.mubr.msk.f32.vlgmr.msra.gmra.mrb[0].mxu0 %vm586_vm9, %v576_v54  ;;  %v547_v62 = vsel %vm299_vm2, %v546_v59, %v542_v50 }
  0xcf   : > { %1281 = vmatprep.mubr.msk.f32.mxu0 %vm1336_vm0, %v1790_v49  ;;  %v513_v40 = vpop.xlane.xlu1 %512  ;;  %v384_v3 = vsel %vm299_vm2, %v383_v29, %v379_v35 }
  0xd0   : > { %v350_v41 = vpop.xlane.xlu0 %349  ;;  %v551_v58 = vrot.slane %v513_v40, %v1586_v22 }
  0xd1   : > { %v388_v61 = vrot.slane %v350_v41, %v1586_v22 }
  0xd2   : > { %v552_v10 = vsel %vm306_vm3, %v551_v58, %v547_v62  ;;  %v1791_v58 = vmov 0.0|0.0  }
  0xd3   : > { %v516_v48 = vpop.xlane.xlu1 %515  ;;  %v389_v51 = vsel %vm306_vm3, %v388_v61, %v384_v3  ;;  %v747_v61 = vld [vmem:[%s1781_s3 + $0x8] sm:$0xff] }
  0xd4   : > { %v353_v17 = vpop.xlane.xlu0 %352  ;;  %v556_v43 = vrot.slane %v516_v48, %v1588_v23 }
  0xd5   : > { %v393_v11 = vrot.slane %v353_v17, %v1588_v23 }
  0xd6   : > { %v557_v46 = vsel %vm313_vm4, %v556_v43, %v552_v10  ;;  %v748_v43 = vld [vmem:[%s1781_s3 + $0x10] sm:$0xff] }
  0xd7   : > { %v519_v54 = vpop.xlane.xlu1 %518  ;;  %v394_v53 = vsel %vm313_vm4, %v393_v11, %v389_v51  ;;  %v749_v11 = vld [vmem:[%s1781_s3 + $0x18] sm:$0xff]  ;;  %v750_v51 = vld [vmem:[%s1781_s3 + $0x20] sm:$0xff] }
  0xd8   : > { %v356_v52 = vpop.xlane.xlu0 %355  ;;  %v561_v16 = vrot.slane %v519_v54, %v1591_v34  ;;  %v1300_v10 = vpack.c.bf16 %v749_v11, %v748_v43  ;;  %v751_v54 = vld [vmem:[%s1781_s3 + $0x28] sm:$0xff] }
  0xd9   : > { %v398_v22 = vrot.slane %v356_v52, %v1591_v34  ;;  %v1303_v52 = vpack.c.bf16 %v751_v54, %v750_v51 }
  0xda   : > { %v562_v57 = vsel %vm320_vm5, %v561_v16, %v557_v46  ;;  %v752_v16 = vld [vmem:[%s1781_s3 + $0x30] sm:$0xff] }
  0xdb   : > { %v522_v55 = vpop.xlane.xlu1 %521  ;;  %v399_v23 = vsel %vm320_vm5, %v398_v22, %v394_v53  ;;  %v828_v53 = vld [vmem:[%s1782_s4] sm:$0xf] }
  0xdc   : > { %v359_v47 = vpop.xlane.xlu0 %358  ;;  %v566_v63 = vrot.slane %v522_v55, %v1595_v56  ;;  %1280 = vmatpush3.msk.msra.mxu0 %vm666_vm10, %v828_v53 }
  0xdd   : > { %v403_v7 = vrot.slane %v359_v47, %v1595_v56  ;;  %v661_v56 = vld [vmem:[%s1780_s2] sm:$0xf] }
  0xde   : > { %v567_v28 = vsel %vm327_vm6, %v566_v63, %v562_v57  ;;  %1256 = vmatpush3.msk.msra.mxu1 %vm666_vm10, %v661_v56 }
  0xdf   : > { %v404_v59 = vsel %vm327_vm6, %v403_v7, %v399_v23  ;;  %v525_v29 = vpop.xlane.xlu1 %524  ;;  %1296 = vmatprep.subr.bf16.mxu1 %v1791_v58 }
  0xe0   : > { %v362_v34 = vpop.xlane.xlu0 %361  ;;  %v571_v40 = vrot.slane %v525_v29, %v1606_v60 }
  0xe1   : > { %v408_v41 = vrot.slane %v362_v34, %v1606_v60  ;;  %v746_v60 = vld [vmem:[%s1781_s3] sm:$0xff] }
  0xe2   : > { %v572_v35 = vsel %vm334_vm7, %v571_v40, %v567_v28  ;;  %v1297_v3 = vpack.c.bf16 %v747_v61, %v746_v60 }
  0xe3   : > { %v409_v50 = vsel %vm334_vm7, %v408_v41, %v404_v59  ;;  %574 = vst.msk [vmem:[#allocation3 + $0x1] sm:$0x1] %vm337_vm8, %v572_v35 }
  0xe4   : > { %411 = vst.msk [vmem:[#allocation3] sm:$0x1] %vm337_vm8, %v409_v50 }
  0xeb   : > { %v577_v46 = vld [vmem:[#allocation3] sm:$0x3] }
 0x1a1   : > { %v656_v62 = vpop.f32.mrb[0].mxu0 }
 0x1a2   : > { %v660_v48 = vmax.f32 %v656_v62, 0.0  ;;  %v1254_v17 = vpop.f32.mrb[1].mxu0 }
 0x1a4   : > { %1258 = vmatmul.mubr.msk.f32.vlgmr.msra.gmra.mrb[0].mxu1 %vm662_vm11, %v660_v48 }
 0x1a5   : > { %1298 = vmatpush3.bf16.msra.mxu1 %v1297_v3  ;;  %1276 = vmatprep.mubr.msk.f32.mxu1 %vm1336_vm0, %v1790_v49  ;;  %v753_v49 = vld [vmem:[%s1781_s3 + $0x38] sm:$0xff] }
 0x1a6   : > { %1299 = vmatprep.subr.bf16.mxu1 %v1791_v58  ;;  %v1306_v22 = vpack.c.bf16 %v753_v49, %v752_v16 }
 0x1a9   : > { %1301 = vmatpush3.bf16.msra.mxu1 %v1300_v10 }
 0x1aa   : > { %1302 = vmatprep.subr.bf16.mxu1 %v1791_v58 }
 0x1ad   : > { %1304 = vmatpush3.bf16.msra.mxu1 %v1303_v52 }
 0x1ae   : > { %1305 = vmatprep.subr.bf16.mxu1 %v1791_v58 }
 0x1b1   : > { %1307 = vmatpush3.bf16.msra.mxu1 %v1306_v22 }
 0x1b4   : > { %1277 = vmatmul.mubr.msk.f32.vlgmr.msra.gmra.mrb[2].mxu1 %vm586_vm9, %v577_v46 }
 0x277   : > { %v736_v55 = vpop.f32.mrb[0].mxu1 }
 0x278   : > { %v1259_v47 = vpop.f32.mrb[1].mxu1  ;;  %v1171_v7 = vmul.f32 -1.442695, %v736_v55 }
 0x27a   : > { %1319 = vpow2.f32 %v1171_v7 }
 0x284   : > { %v1320_v34 = vpop.eup %1319 }
 0x285   : > { %v743_v40 = vadd.f32 1.0, %v1320_v34 }
 0x287   : > { %v823_v57 = vpop.f32.mrb[2].mxu1 }
 0x288   : > { %v827_v23 = vmax.f32 %v823_v57, 0.0  ;;  %v1278_v63 = vpop.f32.mrb[3].mxu1 }
 0x28a   : > { %1282 = vmatmul.mubr.msk.f32.vlgmr.msra.gmra.mrb[2].mxu0 %vm662_vm11, %v827_v23 }
 0x35d   : > { %v901_v28 = vpop.f32.mrb[2].mxu0 }
 0x35e   : > { %v1175_v59 = vmul.f32 -1.442695, %v901_v28  ;;  %v1283_v29 = vpop.f32.mrb[3].mxu0 }
 0x360   : > { %1321 = vpow2.f32 %v1175_v59 }
 0x361   : > { %1323 = vrcp.f32 %v743_v40 }
 0x36a   : > { %v1322_v41 = vpop.eup %1321 }
 0x36b   : > { %v908_v35 = vadd.f32 1.0, %v1322_v41  ;;  %v1324_v50 = vpop.eup %1323 }
 0x36d   : > { %1325 = vrcp.f32 %v908_v35 }
 0x377   : > { %v1326_v56 = vpop.eup %1325 }
 0x378   : > { %v911_v58 = vadd.f32 %v1326_v56, %v1324_v50 }
 0x37a   : > { %913 = vst.msk [vmem:[#allocation4] sm:$0x3] %vm912_vm12, %v911_v58 }
 0x381   : > { %v1176_v60 = vld [vmem:[#allocation4] ss:$0 sm:$0xff]  ;;  %v1193_v61 = vld [vmem:[#allocation4 + $0x1] ss:$0 sm:$0xff] }
 0x382   : > { %940 = vbcast.lane.b32.xlu1 %v1176_v60, 264  ;;  %936 = vbcast.lane.b32.xlu0 %v1176_v60, 256 }
 0x386   : > { %944 = vbcast.lane.b32.xlu1 %v1176_v60, 272  ;;  %952 = vbcast.lane.b32.xlu0 %v1176_v60, 288 }
 0x38a   : > { %948 = vbcast.lane.b32.xlu1 %v1176_v60, 280  ;;  %960 = vbcast.lane.b32.xlu0 %v1176_v60, 304 }
 0x38e   : > { %956 = vbcast.lane.b32.xlu1 %v1176_v60, 296  ;;  %1020 = vbcast.lane.b32.xlu0 %v1193_v61, 256 }
 0x392   : > { %964 = vbcast.lane.b32.xlu1 %v1176_v60, 312  ;;  %1028 = vbcast.lane.b32.xlu0 %v1193_v61, 272 }
 0x396   : > { %1024 = vbcast.lane.b32.xlu1 %v1193_v61, 264  ;;  %1036 = vbcast.lane.b32.xlu0 %v1193_v61, 288 }
 0x39a   : > { %1032 = vbcast.lane.b32.xlu1 %v1193_v61, 280  ;;  %1044 = vbcast.lane.b32.xlu0 %v1193_v61, 304 }
 0x39e   : > { %1040 = vbcast.lane.b32.xlu1 %v1193_v61, 296 }
 0x3a2   : > { %1048 = vbcast.lane.b32.xlu1 %v1193_v61, 312 }
 0x3f4   : > { %v941_v62 = vpop.permute.xlu1 %940  ;;  %v937_v3 = vpop.permute.xlu0 %936 }
 0x3f5   : > { %v968_v48 = vmul.f32 %v941_v62, %v1409_v8  ;;  %v969_v17 = vmul.f32 %v941_v62, %v1412_v9  ;;  %v966_v43 = vmul.f32 %v937_v3, %v1393_v2  ;;  %v967_v11 = vmul.f32 %v937_v3, %v1398_v4 }
 0x3f7   : > { %984 = vst [vmem:[%s1709_s16 + $0x10] sm:$0xff] %v968_v48  ;;  %985 = vst [vmem:[%s1709_s16 + $0x18] sm:$0xff] %v969_v17 }
 0x3f8   : > { %982 = vst [vmem:[%s1709_s16] sm:$0xff] %v966_v43  ;;  %983 = vst [vmem:[%s1709_s16 + $0x8] sm:$0xff] %v967_v11  ;;  %v945_v10 = vpop.permute.xlu1 %944  ;;  %v953_v51 = vpop.permute.xlu0 %952 }
 0x3f9   : > { %v970_v54 = vmul.f32 %v945_v10, %v1425_v14  ;;  %v971_v8 = vmul.f32 %v945_v10, %v1428_v15  ;;  %v974_v9 = vmul.f32 %v953_v51, %v1457_v26  ;;  %v975_v2 = vmul.f32 %v953_v51, %v1460_v27 }
 0x3fb   : > { %986 = vst [vmem:[%s1709_s16 + $0x20] sm:$0xff] %v970_v54  ;;  %987 = vst [vmem:[%s1709_s16 + $0x28] sm:$0xff] %v971_v8 }
 0x3fc   : > { %990 = vst [vmem:[%s1709_s16 + $0x40] sm:$0xff] %v974_v9  ;;  %991 = vst [vmem:[%s1709_s16 + $0x48] sm:$0xff] %v975_v2  ;;  %v949_v4 = vpop.permute.xlu1 %948  ;;  %v961_v52 = vpop.permute.xlu0 %960 }
 0x3fd   : > { %v972_v16 = vmul.f32 %v949_v4, %v1441_v20  ;;  %v973_v14 = vmul.f32 %v949_v4, %v1444_v21  ;;  %v978_v15 = vmul.f32 %v961_v52, %v1489_v38  ;;  %v979_v26 = vmul.f32 %v961_v52, %v1492_v39 }
 0x3ff   : > { %988 = vst [vmem:[%s1709_s16 + $0x30] sm:$0xff] %v972_v16  ;;  %989 = vst [vmem:[%s1709_s16 + $0x38] sm:$0xff] %v973_v14 }
 0x400   : > { %994 = vst [vmem:[%s1709_s16 + $0x60] sm:$0xff] %v978_v15  ;;  %995 = vst [vmem:[%s1709_s16 + $0x68] sm:$0xff] %v979_v26  ;;  %v957_v27 = vpop.permute.xlu1 %956  ;;  %v1021_v49 = vpop.permute.xlu0 %1020 }
 0x401   : > { %v976_v22 = vmul.f32 %v957_v27, %v1473_v32  ;;  %v977_v20 = vmul.f32 %v957_v27, %v1476_v33  ;;  %v1050_v21 = vmul.f32 %v1387_v0, %v1021_v49  ;;  %v1051_v38 = vmul.f32 %v1390_v1, %v1021_v49 }
 0x403   : > { %992 = vst [vmem:[%s1709_s16 + $0x50] sm:$0xff] %v976_v22  ;;  %993 = vst [vmem:[%s1709_s16 + $0x58] sm:$0xff] %v977_v20 }
 0x404   : > { %1194 = vst [vmem:[%s1709_s16 + $0x80] sm:$0xff] %v1050_v21  ;;  %1195 = vst [vmem:[%s1709_s16 + $0x88] sm:$0xff] %v1051_v38  ;;  %v965_v39 = vpop.permute.xlu1 %964  ;;  %v1029_v46 = vpop.permute.xlu0 %1028 }
 0x405   : > { %v980_v53 = vmul.f32 %v965_v39, %v1505_v44  ;;  %v981_v32 = vmul.f32 %v965_v39, %v1508_v45  ;;  %v1054_v33 = vmul.f32 %v1419_v12, %v1029_v46  ;;  %v1055_v0 = vmul.f32 %v1422_v13, %v1029_v46 }
 0x407   : > { %996 = vst [vmem:[%s1709_s16 + $0x70] sm:$0xff] %v980_v53  ;;  %997 = vst [vmem:[%s1709_s16 + $0x78] sm:$0xff] %v981_v32 }
 0x408   : > { %1198 = vst [vmem:[%s1709_s16 + $0xa0] sm:$0xff] %v1054_v33  ;;  %1199 = vst [vmem:[%s1709_s16 + $0xa8] sm:$0xff] %v1055_v0  ;;  %v1025_v1 = vpop.permute.xlu1 %1024  ;;  %v1037_v55 = vpop.permute.xlu0 %1036 }
 0x409   : > { %v1052_v47 = vmul.f32 %v1401_v5, %v1025_v1  ;;  %v1053_v44 = vmul.f32 %v1404_v6, %v1025_v1  ;;  %v1058_v45 = vmul.f32 %v1451_v24, %v1037_v55  ;;  %v1059_v12 = vmul.f32 %v1454_v25, %v1037_v55 }
 0x40b   : > { %1196 = vst [vmem:[%s1709_s16 + $0x90] sm:$0xff] %v1052_v47  ;;  %1197 = vst [vmem:[%s1709_s16 + $0x98] sm:$0xff] %v1053_v44 }
 0x40c   : > { %1202 = vst [vmem:[%s1709_s16 + $0xc0] sm:$0xff] %v1058_v45  ;;  %1203 = vst [vmem:[%s1709_s16 + $0xc8] sm:$0xff] %v1059_v12  ;;  %v1033_v13 = vpop.permute.xlu1 %1032  ;;  %v1045_v57 = vpop.permute.xlu0 %1044 }
 0x40d   : > { %v1056_v23 = vmul.f32 %v1435_v18, %v1033_v13  ;;  %v1057_v5 = vmul.f32 %v1438_v19, %v1033_v13  ;;  %v1062_v6 = vmul.f32 %v1483_v36, %v1045_v57  ;;  %v1063_v24 = vmul.f32 %v1486_v37, %v1045_v57  ;;  %v1792_v19 = vld [vmem:[#allocation5_spill] sm:$0xff] }
 0x40f   : > { %1200 = vst [vmem:[%s1709_s16 + $0xb0] sm:$0xff] %v1056_v23  ;;  %1201 = vst [vmem:[%s1709_s16 + $0xb8] sm:$0xff] %v1057_v5 }
 0x410   : > { %1206 = vst [vmem:[%s1709_s16 + $0xe0] sm:$0xff] %v1062_v6  ;;  %1207 = vst [vmem:[%s1709_s16 + $0xe8] sm:$0xff] %v1063_v24  ;;  %v1041_v25 = vpop.permute.xlu1 %1040 }
 0x411   : > { %v1060_v63 = vmul.f32 %v1467_v30, %v1041_v25  ;;  %v1061_v7 = vmul.f32 %v1470_v31, %v1041_v25 }
 0x413   : > { %1204 = vst [vmem:[%s1709_s16 + $0xd0] sm:$0xff] %v1060_v63  ;;  %1205 = vst [vmem:[%s1709_s16 + $0xd8] sm:$0xff] %v1061_v7 }
 0x414   : > { %v1049_v18 = vpop.permute.xlu1 %1048 }
 0x415   : > { %v1064_v28 = vmul.f32 %v1499_v42, %v1049_v18  ;;  %v1065_v59 = vmul.f32 %v1792_v19, %v1049_v18 }
 0x417   : > { %1208 = vst [vmem:[%s1709_s16 + $0xf0] sm:$0xff] %v1064_v28  ;;  %1209 = vst [vmem:[%s1709_s16 + $0xf8] sm:$0xff] %v1065_v59 }
 0x418 PF: > { %s15_s18 = sadd.s32 1, %s1333_s18  }
 0x419   : > { %p12_p4 = scmp.ge.s32.totalorder %s15_s18, 4  }
 0x41b   :  { %14 = sbr.rel (!%p12_p4) target bundleno = 1 (0x1), region = 72 }

</bundles_post_ra>
